<compile_context>
chip_gen: v7x
topology: tpu7x:2x2x1
jax: 0.10.0
libtpu: 0.0.40
codegen_flags: <defaults>
</compile_context>

<pallas_src>
import jax
import jax.numpy as jnp
from jax.experimental import pallas as pl
from jax.experimental.pallas import tpu as pltpu


def _round_up(x, m):
    return ((x + m - 1) // m) * m


def _cdiv(a, b):
    return (a + b - 1) // b


def _sublane(dtype):
    # Sublane packing granularity for the second-to-last dim.
    return {4: 8, 2: 16, 1: 32}.get(jnp.dtype(dtype).itemsize, 8)


def _physical_vmem_bytes():
    try:
        info = pltpu.get_tpu_info()
        return int(getattr(info, "vmem_capacity_bytes", 64 << 20))
    except Exception:
        return 64 << 20  # conservative: v7x per-TC VMEM


# ----------------------------- kernels --------------------------------------

def _linear_kernel_single_k(x_ref, w_ref, b_ref, o_ref):
    # Whole K strip in one tile: no accumulator scratch, no init/finalize.
    acc = jnp.dot(x_ref[...], w_ref[...], preferred_element_type=jnp.float32)
    o_ref[...] = (acc + b_ref[...].astype(jnp.float32)).astype(o_ref.dtype)


def _linear_kernel_multi_k(x_ref, w_ref, b_ref, o_ref, acc_ref):
    k = pl.program_id(2)
    part = jnp.dot(x_ref[...], w_ref[...], preferred_element_type=jnp.float32)

    @pl.when(k == 0)
    def _():
        acc_ref[...] = part          # first K tile: overwrite (no zero-init pass)

    @pl.when(k > 0)
    def _():
        acc_ref[...] += part

    @pl.when(k == pl.num_programs(2) - 1)
    def _():
        o_ref[...] = (acc_ref[...] + b_ref[...].astype(jnp.float32)).astype(
            o_ref.dtype
        )


# ----------------------------- wrappers --------------------------------------

def prepare_embedding_params(weight_t, bias, *, tn=512, tk=512,
                             compute_dtype=jnp.bfloat16):
    """Pad / cast the Linear parameters once (hoisted out of the per-call path).

    weight_t : (d_dim, embed_dim)  — transpose of PyTorch Linear.weight
    bias     : (embed_dim,)
    """
    d_dim, embed_dim = weight_t.shape

    # N tiling: tight padding to 128-lane multiples; small N uses the full dim
    # (block == full array dim is always legal) so N is never padded / sliced.
    if embed_dim < 128:
        n_n, tn_eff = 1, embed_dim
    else:
        n_n = _cdiv(embed_dim, tn)
        tn_eff = _round_up(_cdiv(embed_dim, n_n), 128)
    Np = n_n * tn_eff

    # K tiling: single full-dim block when it fits (common case), else 128-mult.
    n_k = _cdiv(d_dim, tk)
    tk_eff = d_dim if n_k == 1 else _round_up(_cdiv(d_dim, n_k), 128)
    Kp = n_k * tk_eff

    w = weight_t.astype(compute_dtype)
    if (Kp, Np) != (d_dim, embed_dim):
        w = jnp.pad(w, ((0, Kp - d_dim), (0, Np - embed_dim)))

    b2d = bias.reshape(1, embed_dim).astype(jnp.float32)
    if Np != embed_dim:
        b2d = jnp.pad(b2d, ((0, 0), (0, Np - embed_dim)))

    return dict(w=w, b2d=b2d, d_dim=d_dim, embed_dim=embed_dim,
                Kp=Kp, Np=Np, tk=tk_eff, tn=tn_eff, n_k=n_k, n_n=n_n,
                compute_dtype=compute_dtype)


def embedding_forward(x, params, *, tm=512):
    """y = x @ weight_t + bias over the last axis of x (nn.Linear forward)."""
    d_dim, embed_dim = params["d_dim"], params["embed_dim"]
    Kp, Np = params["Kp"], params["Np"]
    tk, tn = params["tk"], params["tn"]
    n_k, n_n = params["n_k"], params["n_n"]
    w, b2d = params["w"], params["b2d"]
    compute_dtype = params["compute_dtype"]

    assert x.shape[-1] == d_dim
    lead_shape = x.shape[:-1]
    out_dtype = x.dtype

    x2d = x.reshape(-1, d_dim).astype(compute_dtype)
    M = x2d.shape[0]
    sub = _sublane(compute_dtype)

    # Tight ragged-M tiling: pick block count first, derive tile size.
    n_m = max(1, _cdiv(M, tm))
    tm_eff = min(tm, _round_up(_cdiv(M, n_m), sub))
    # v7x dual-TC: make sure both cores get a parallel block when possible.
    if n_m * n_n == 1 and M >= 2 * sub:
        n_m = 2
        tm_eff = _round_up(_cdiv(M, n_m), sub)
    Mp = n_m * tm_eff

    if (Mp, Kp) != (M, d_dim):
        x2d = jnp.pad(x2d, ((0, Mp - M), (0, Kp - d_dim)))

    # VMEM budget: double-buffered tiles (+ f32 accumulator on the multi-K
    # path), capped below the physical per-core capacity with headroom for
    # Mosaic internal scratch / semaphores.
    cb = jnp.dtype(compute_dtype).itemsize
    ob = jnp.dtype(out_dtype).itemsize
    est = (2 * (tm_eff * tk * cb + tk * tn * cb + tn * 4)
           + 2 * tm_eff * tn * ob
           + (tm_eff * tn * 4 if n_k > 1 else 0))
    phys = _physical_vmem_bytes()
    cap = max(phys - (16 << 20), 32 << 20)
    vmem_limit = int(min(max(est + (8 << 20), 32 << 20), cap))

    if n_k == 1:
        out = pl.pallas_call(
            _linear_kernel_single_k,
            out_shape=jax.ShapeDtypeStruct((Mp, Np), out_dtype),
            grid_spec=pltpu.PrefetchScalarGridSpec(
                num_scalar_prefetch=0,
                grid=(n_m, n_n),
                in_specs=[
                    pl.BlockSpec((tm_eff, tk), lambda i, j: (i, 0)),
                    pl.BlockSpec((tk, tn), lambda i, j: (0, j)),
                    pl.BlockSpec((1, tn), lambda i, j: (0, j)),
                ],
                out_specs=pl.BlockSpec((tm_eff, tn), lambda i, j: (i, j)),
            ),
            compiler_params=pltpu.CompilerParams(
                dimension_semantics=("parallel", "parallel"),
                vmem_limit_bytes=vmem_limit,
            ),
        )(x2d, w, b2d)
    else:
        out = pl.pallas_call(
            _linear_kernel_multi_k,
            out_shape=jax.ShapeDtypeStruct((Mp, Np), out_dtype),
            grid_spec=pltpu.PrefetchScalarGridSpec(
                num_scalar_prefetch=0,
                grid=(n_m, n_n, n_k),
                in_specs=[
                    pl.BlockSpec((tm_eff, tk), lambda i, j, k: (i, k)),
                    pl.BlockSpec((tk, tn), lambda i, j, k: (k, j)),
                    pl.BlockSpec((1, tn), lambda i, j, k: (0, j)),
                ],
                out_specs=pl.BlockSpec((tm_eff, tn), lambda i, j, k: (i, j)),
                scratch_shapes=[pltpu.VMEM((tm_eff, tn), jnp.float32)],
            ),
            compiler_params=pltpu.CompilerParams(
                dimension_semantics=("parallel", "parallel", "arbitrary"),
                vmem_limit_bytes=vmem_limit,
            ),
        )(x2d, w, b2d)

    if (Mp, Np) != (M, embed_dim):
        out = out[:M, :embed_dim]
    return out.reshape(*lead_shape, embed_dim)


if __name__ == "__main__":
    # Module config (small demo shapes consistent with the forward pass).
    d_dim = 32
    embed_dim = 64
    batch, seq = 2, 8

    key = jax.random.PRNGKey(0)
    kx, kw, kb = jax.random.split(key, 3)

    # nn.Linear default init: U(-1/sqrt(d_dim), 1/sqrt(d_dim)).
    # PyTorch stores weight as (embed_dim, d_dim); we keep its transpose.
    bound = 1.0 / (d_dim ** 0.5)
    weight = jax.random.uniform(kw, (embed_dim, d_dim), jnp.float32, -bound, bound)
    bias = jax.random.uniform(kb, (embed_dim,), jnp.float32, -bound, bound)
    weight_t = weight.T  # (d_dim, embed_dim)

    x = jax.random.normal(kx, (batch, seq, d_dim), jnp.float32)
    y_ref = x @ weight_t + bias

    # --- default bf16 MXU path (f32 accumulation) ---
    params = prepare_embedding_params(weight_t, bias, compute_dtype=jnp.bfloat16)
    y = jax.block_until_ready(embedding_forward(x, params))
    assert y.shape == (batch, seq, embed_dim)
    assert y.dtype == x.dtype
    assert jnp.allclose(y, y_ref, atol=2e-2, rtol=2e-2)  # bf16-operand tolerance

    # --- exact f32 path (matches nn.Linear numerics) ---
    params_f32 = prepare_embedding_params(weight_t, bias, compute_dtype=jnp.float32)
    y32 = jax.block_until_ready(embedding_forward(x, params_f32))
    assert jnp.allclose(y32, y_ref, atol=1e-5, rtol=1e-5)

    # --- exercise the multi-K (accumulator) kernel on a slightly deeper K ---
    d_big = 256
    kw2, kb2, kx2 = jax.random.split(jax.random.PRNGKey(1), 3)
    bound2 = 1.0 / (d_big ** 0.5)
    w2_t = jax.random.uniform(kw2, (d_big, embed_dim), jnp.float32, -bound2, bound2)
    b2 = jax.random.uniform(kb2, (embed_dim,), jnp.float32, -bound2, bound2)
    x2 = jax.random.normal(kx2, (batch, seq, d_big), jnp.float32)
    params2 = prepare_embedding_params(w2_t, b2, tk=128, compute_dtype=jnp.bfloat16)
    y2 = jax.block_until_ready(embedding_forward(x2, params2))
    assert jnp.allclose(y2, x2 @ w2_t + b2, atol=2e-2, rtol=2e-2)

    print("KERNEL_OK")
</pallas_src>

<mosaic_0001>
module attributes {stable_mosaic.version = 11 : i64} {
  func.func @_linear_kernel_single_k(%arg0: i32, %arg1: i32, %arg2: memref<16x32xbf16, #tpu.memory_space<vmem>>, %arg3: memref<32x64xbf16, #tpu.memory_space<vmem>>, %arg4: memref<1x64xf32, #tpu.memory_space<vmem>>, %arg5: memref<16x64xf32, #tpu.memory_space<vmem>>) attributes {dimension_semantics = [#tpu.dimension_semantics<parallel>, #tpu.dimension_semantics<parallel>], iteration_bounds = array<i64: 1, 1>, scalar_prefetch = 0 : i64, scratch_operands = 0 : i64, tpu.core_type = #tpu.core_type<tc>, window_params = [{transform_indices = @transform_0, window_bounds = array<i64: 16, 32>}, {transform_indices = @transform_1, window_bounds = array<i64: 32, 64>}, {transform_indices = @transform_2, window_bounds = array<i64: 1, 64>}, {transform_indices = @transform_3, window_bounds = array<i64: 16, 64>}]} {
    %c0 = arith.constant 0 : index
    %c0_0 = arith.constant 0 : index
    %0 = vector.load %arg2[%c0, %c0_0] : memref<16x32xbf16, #tpu.memory_space<vmem>>, vector<16x32xbf16>
    %c0_1 = arith.constant 0 : index
    %c0_2 = arith.constant 0 : index
    %1 = vector.load %arg3[%c0_1, %c0_2] : memref<32x64xbf16, #tpu.memory_space<vmem>>, vector<32x64xbf16>
    %cst = arith.constant dense<0.000000e+00> : vector<16x64xf32>
    %2 = tpu.matmul %0, %1, %cst {dimension_numbers = #tpu.dot_dimension_numbers<[1], [0], [0], [1], [0, 0, 1, 1], [], []>} : vector<16x32xbf16>, vector<32x64xbf16>, vector<16x64xf32> -> vector<16x64xf32>
    %c0_3 = arith.constant 0 : index
    %c0_4 = arith.constant 0 : index
    %3 = vector.load %arg4[%c0_3, %c0_4] : memref<1x64xf32, #tpu.memory_space<vmem>>, vector<1x64xf32>
    %4 = vector.broadcast %3 : vector<1x64xf32> to vector<16x64xf32>
    %5 = arith.addf %2, %4 : vector<16x64xf32>
    %c0_5 = arith.constant 0 : index
    %c0_6 = arith.constant 0 : index
    %6 = vector.load %arg5[%c0_5, %c0_6] : memref<16x64xf32, #tpu.memory_space<vmem>>, vector<16x64xf32>
    tpu.vector_store %arg5[%c0_5, %c0_6], %5 {strides = array<i32>} : memref<16x64xf32, #tpu.memory_space<vmem>>, vector<16x64xf32>,
    return
  }
  func.func @transform_0(%arg0: i32, %arg1: i32) -> (i32, i32) {
    %c0_i32 = arith.constant 0 : i32
    %c0_i32_0 = arith.constant 0 : i32
    return %arg0, %c0_i32 : i32, i32
  }
  func.func @transform_1(%arg0: i32, %arg1: i32) -> (i32, i32) {
    %c0_i32 = arith.constant 0 : i32
    %c0_i32_0 = arith.constant 0 : i32
    return %c0_i32, %arg1 : i32, i32
  }
  func.func @transform_2(%arg0: i32, %arg1: i32) -> (i32, i32) {
    %c0_i32 = arith.constant 0 : i32
    %c0_i32_0 = arith.constant 0 : i32
    return %c0_i32, %arg1 : i32, i32
  }
  func.func @transform_3(%arg0: i32, %arg1: i32) -> (i32, i32) {
    %c0_i32 = arith.constant 0 : i32
    return %arg0, %arg1 : i32, i32
  }
}

</mosaic_0001>

<bundles_post_ra>
// kernel: tpu_custom_call.1
= control target key start
LH: loop header
LB: loop body
LE: loop exit
PB: predicated region body
PF: predicated region fallthrough
CT: control target
= control target key end

     0   :  { %8 = vsyncpa [#allocation3], 0  ;;  %s308_s0 = inlined_call_operand.hbm [shape: bf16[16,32], index: 0, kind: input, shape index: {}]   ;;  %s309_s1 = inlined_call_operand.hbm [shape: bf16[32,64], index: 1, kind: input, shape index: {}]   ;;  %s310_s2 = inlined_call_operand.vmem [shape: f32[1,64], index: 2, kind: input, shape index: {}]   ;;  %s311_s3 = inlined_call_operand.hbm [shape: f32[16,64], index: 3, kind: output, shape index: {}]  }
   0x1   :  { %9 = vsyncpa [#allocation6], 0 }
   0x2   :  { %10 = vsyncpa [#allocation4], 0  ;;  %s240_s12 = smov [#allocation2]   ;;  %s168_s16 = scalar_lea.hbm %s308_s0, 128 }
   0x3   :  { %s16_s13 = sshll.u32 %s240_s12, 4  ;;  %p169_p0 = scmp.ne.s32.totalorder %s308_s0, %s168_s16  ;;  %s17_s13 = int_to_ptr.vmem [resolvable:$true] %s16_s13 }
   0x4   :  { %p172_p1 = scmp.lt.u32.totalorder %s168_s16, %s308_s0 }
   0x6   :  { %p174_p2 = pnand %p172_p1, %p169_p0 }
   0x8   :  { %177 = shalt.err (!%p174_p2)
}
   0x9   :  { %s178_s21 = scalar_lea.vmem %s17_s13, 128  ;;  %p183_p4 = scmp.lt.s32.totalorder %s17_s13, %s17_s13 }
   0xa   :  { %p179_p3 = scmp.ne.s32.totalorder %s17_s13, %s178_s21  ;;  %p184_p5 = scmp.lt.s32.totalorder %s178_s21, %s178_s21 }
   0xc   :  { %p185_p6 = por %p184_p5, %p183_p4 }
   0xe   :  { %p186_p7 = pnand %p185_p6, %p179_p3 }
  0x10   :  { %189 = shalt.err (!%p186_p7)
}
  0x11   :  { %s241_s22 = smov 64   ;;  %s242_s23 = smov 4  }
  0x12   :  { %22 = dma.hbm_to_vmem [thread:$0]  %s308_s0, 128, %s17_s13, [#allocation3], %s241_s22, %s241_s22, %s242_s23  }
  0x13   :  { %s243_s26 = smov [#allocation5]   ;;  %s190_s30 = scalar_lea.hbm %s309_s1, 256 }
  0x14   :  { %s28_s27 = sshll.u32 %s243_s26, 4  ;;  %p191_p8 = scmp.ne.s32.totalorder %s309_s1, %s190_s30  ;;  %s29_s27 = int_to_ptr.vmem [resolvable:$true] %s28_s27 }
  0x15   :  { %p194_p9 = scmp.lt.u32.totalorder %s190_s30, %s309_s1 }
  0x17   :  { %p196_p10 = pnand %p194_p9, %p191_p8 }
  0x19   :  { %199 = shalt.err (!%p196_p10)
}
  0x1a   :  { %s200_s8 = scalar_lea.vmem %s29_s27, 256  ;;  %p205_p12 = scmp.lt.s32.totalorder %s29_s27, %s29_s27 }
  0x1b   :  { %p201_p11 = scmp.ne.s32.totalorder %s29_s27, %s200_s8  ;;  %p206_p13 = scmp.lt.s32.totalorder %s200_s8, %s200_s8 }
  0x1d   :  { %p207_p0 = por %p206_p13, %p205_p12 }
  0x1f   :  { %p208_p1 = pnand %p207_p0, %p201_p11 }
  0x21   :  { %211 = shalt.err (!%p208_p1)
}
  0x22   :  { %34 = dma.hbm_to_vmem [thread:$0]  %s309_s1, 256, %s29_s27, [#allocation6], %s241_s22, %s241_s22, %s242_s23  }
  0x23   :  { %234 = dma.done.wait [#allocation3], 128  }
  0x24   :  { %235 = vsyncadd [#allocation3], 4294967168 }
  0x25   :  { %236 = dma.done.wait [#allocation6], 256  }
  0x26   :  { %237 = vsyncadd [#allocation6], 4294967040  ;;  %v244_v0 = vmov 0.0   ;;  %vm245_vm0 = vmmov 0   ;;  %v165_v1 = vld [vmem:[#allocation5] sm:$0xff]   ;;  %v166_v2 = vld [vmem:[#allocation5 + $0x8] sm:$0xff]  }
  0x27   :  { %148 = vmatprep.subr.bf16.mxu0 %v244_v0  ;;  %152 = vmatprep.mubr.msk.bf16.mxu0 %vm245_vm0, %v244_v0  ;;  %v167_v3 = vld [vmem:[#allocation2] sm:$0xff]   ;;  %vm74_vm1 = vcmask 261120   ;;  %s246_s1 = smov [#allocation7]   ;;  %vm119_vm2 = vcmask 523264  }
  0x28   :  { %149 = vmatpush3.bf16.msra.mxu0 %v165_v1  ;;  %v140_v4 = vld [vmem:[%s310_s2] ss:$0 sm:$0xff]  ;;  %s127_s12 = sshll.u32 %s246_s1, 4  ;;  %s128_s12 = int_to_ptr.vmem [resolvable:$true] %s127_s12 }
  0x29   :  { %150 = vmatprep.subr.bf16.mxu0 %v244_v0  ;;  %s212_s13 = scalar_lea.vmem %s128_s12, 256  ;;  %p217_p3 = scmp.lt.s32.totalorder %s128_s12, %s128_s12 }
  0x2a   :  { %p213_p2 = scmp.ne.s32.totalorder %s128_s12, %s212_s13  ;;  %p218_p4 = scmp.lt.s32.totalorder %s212_s13, %s212_s13 }
  0x2c   :  { %151 = vmatpush3.bf16.msra.mxu0 %v166_v2  ;;  %p219_p5 = por %p218_p4, %p217_p3 }
  0x2e   :  { %p220_p6 = pnand %p219_p5, %p213_p2 }
  0x2f   :  { %153 = vmatmul.mubr.msk.bf16.vlgmr.msra.gmra.mrb[0].mxu0 %vm74_vm1, %v167_v3 }
 0x102   :  { %v112_v5 = vpop.f32.mrb[0].mxu0 }
 0x103   :  { %v113_v6 = vadd.f32 %v140_v4, %v112_v5  ;;  %v154_v7 = vpop.f32.mrb[1].mxu0 }
 0x104   :  { %v115_v8 = vpop.f32.mrb[2].mxu0 }
 0x105   :  { %120 = vst.msk [vmem:[#allocation7] sm:$0xff] %vm119_vm2, %v113_v6  ;;  %v116_v9 = vadd.f32 %v140_v4, %v115_v8  ;;  %v155_v10 = vpop.f32.mrb[3].mxu0 }
 0x107   :  { %121 = vst.msk [vmem:[#allocation7 + $0x8] sm:$0xff] %vm119_vm2, %v116_v9 }
 0x108   :  { %223 = shalt.err (!%p220_p6)
}
 0x109   :  { %s224_s15 = scalar_lea.hbm %s311_s3, 256 }
 0x10a   :  { %p225_p7 = scmp.ne.s32.totalorder %s311_s3, %s224_s15  ;;  %p228_p8 = scmp.lt.u32.totalorder %s224_s15, %s311_s3 }
 0x10c   :  { %p230_p9 = pnand %p228_p8, %p225_p7 }
 0x10e   :  { %233 = shalt.err (!%p230_p9)
}
 0x10f   :  { %s247_s20 = smov 128   ;;  %s248_s21 = smov 8  }
 0x110   :  { %133 = dma.vmem_to_hbm [thread:$0]  %s128_s12, 256, %s311_s3, [#allocation4], %s247_s20, %s247_s20, %s248_s21  }
 0x111   :  { %238 = dma.done.wait [#allocation4], 256  }
 0x112   :  { %239 = vsyncadd [#allocation4], 4294967040 }
 0x113   :  { %137 = vsyncpa [#allocation3], 1 }
 0x114   :  { %138 = vsyncpa [#allocation6], 1 }
 0x115   :  { %139 = vsyncpa [#allocation4], 1 }

</bundles_post_ra>
